<compile_context>
chip_gen: v7x
topology: tpu7x:2x2x1
jax: 0.10.0
libtpu: 0.0.40
codegen_flags: <defaults>
</compile_context>

<pallas_src>
import numpy as np
import jax
import jax.numpy as jnp
from jax.experimental import pallas as pl
from jax.experimental.pallas import tpu as pltpu

# Fixed (non-trainable) kernels, exactly as in the PyTorch __init__
# (note: the last row of KERNEL_X is [1, 0, -2], reproduced verbatim on purpose).
KERNEL_X = np.array([[1, 0, -1],
                     [2, 0, -2],
                     [1, 0, -2]], dtype=np.float32)
KERNEL_Y = np.array([[1, 2, 1],
                     [0, 0, 0],
                     [-1, -2, -1]], dtype=np.float32)


def _grad_kernel(x_ref, gx_ref, gy_ref, pad_ref):
    # x_ref:   (P, H, W)        unpadded input planes (input dtype)
    # gx/gy:   (P, H, W)        outputs (input dtype)
    # pad_ref: (P, H+2, Wp)     compute-dtype scratch; Wp == W (roll path) or W+2
    P, H, W = gx_ref.shape
    Wp = pad_ref.shape[2]
    cdt = pad_ref.dtype
    lane_padded = (Wp != W)

    xv = x_ref[...].astype(cdt)

    if lane_padded:
        # ---- Narrow / unaligned W: lane-padded scratch + static lane slices ----
        # Zero only the four 1-wide halo strips (not the whole buffer), then do a
        # single interior store.  Every element read below is rewritten this step.
        pad_ref[:, 0:1, :] = jnp.zeros((P, 1, Wp), cdt)
        pad_ref[:, H + 1:H + 2, :] = jnp.zeros((P, 1, Wp), cdt)
        pad_ref[:, 1:H + 1, 0:1] = jnp.zeros((P, H, 1), cdt)
        pad_ref[:, 1:H + 1, W + 1:W + 2] = jnp.zeros((P, H, 1), cdt)
        pad_ref[:, 1:H + 1, 1:W + 1] = xv

        up = pad_ref[:, 0:H, :]          # row i-1 (zero at top edge)
        cur = pad_ref[:, 1:H + 1, :]     # row i
        dn = pad_ref[:, 2:H + 2, :]      # row i+1 (zero at bottom edge)

        a = up + 2.0 * cur + dn          # column weights [1, 2, 1]  (left col of KERNEL_X)
        b = a + dn                       # column weights [1, 2, 2]  (-right col of KERNEL_X)
        d = up - dn                      # column weights [1, 0, -1] (rows of KERNEL_Y)

        gx = a[:, :, 0:W] - b[:, :, 2:W + 2]
        gy = d[:, :, 0:W] + 2.0 * d[:, :, 1:W + 1] + d[:, :, 2:W + 2]
    else:
        # ---- Lane-aligned W: row-halo-only scratch + XLU rolls + edge masks ----
        pad_ref[:, 0:1, :] = jnp.zeros((P, 1, W), cdt)
        pad_ref[:, H + 1:H + 2, :] = jnp.zeros((P, 1, W), cdt)
        pad_ref[:, 1:H + 1, :] = xv      # lane-aligned, full-width (unmasked) store

        up = pad_ref[:, 0:H, :]          # row i-1 (zero at top edge)
        dn = pad_ref[:, 2:H + 2, :]      # row i+1 (zero at bottom edge)
        cur = xv                         # row i: reuse the already-loaded block

        a = up + 2.0 * cur + dn
        b = a + dn
        d = up - dn

        col = jax.lax.broadcasted_iota(jnp.int32, (P, H, W), 2)
        not_first = col > 0
        not_last = col < (W - 1)
        zero = jnp.zeros((), cdt)

        # roll(+1)  -> value at column j-1 (wrap masked to zero at j == 0)
        # roll(W-1) == roll(-1) -> value at column j+1 (wrap masked at j == W-1)
        a_l = jnp.where(not_first, pltpu.roll(a, 1, axis=2), zero)
        b_r = jnp.where(not_last, pltpu.roll(b, W - 1, axis=2), zero)
        d_l = jnp.where(not_first, pltpu.roll(d, 1, axis=2), zero)
        d_r = jnp.where(not_last, pltpu.roll(d, W - 1, axis=2), zero)

        gx = a_l - b_r
        gy = d_l + 2.0 * d + d_r

    gx_ref[...] = gx.astype(gx_ref.dtype)
    gy_ref[...] = gy.astype(gy_ref.dtype)


def _round_up(x, m):
    return ((x + m - 1) // m) * m


def _tpu_caps():
    """(vmem_capacity_bytes, num_tensorcores) with conservative fallbacks."""
    cap = 0
    cores = 0
    try:
        info = pltpu.get_tpu_info()
        cap = int(getattr(info, "vmem_capacity_bytes", 0) or 0)
        for name in ("num_cores", "core_count", "tensorcores_per_chip",
                     "num_tensorcores"):
            val = getattr(info, name, None)
            if val:
                cores = int(val)
                break
    except Exception:
        pass
    if cap <= 0:
        cap = 64 * 1024 * 1024          # conservative: v7x per-TensorCore VMEM
    if cores <= 0:
        # v7x: 64 MiB/TC with 2 TCs per chip; v5e/v6e: 128 MiB with a single TC.
        cores = 2 if cap <= 64 * 1024 * 1024 else 1
    return cap, cores


def _planes_per_step(num_planes, H, W, Wp, in_itemsize, comp_itemsize,
                     budget_bytes, num_cores):
    """Largest plane block keeping the per-step VMEM footprint under budget."""
    lanes_w = _round_up(W, 128)
    lanes_wp = _round_up(Wp, 128)
    rows = _round_up(H, 8)
    rows_pad = _round_up(H + 2, 8)
    per_plane = (
        2 * rows * lanes_w * in_itemsize        # input block (double buffered)
        + 4 * rows * lanes_w * in_itemsize      # two output blocks (double buffered)
        + rows_pad * lanes_wp * comp_itemsize   # row-halo scratch (single buffer)
        + 6 * rows * lanes_w * comp_itemsize    # in-flight compute temporaries (a,b,d,...)
    )
    p = max(1, min(num_planes, budget_bytes // max(per_plane, 1)))
    if num_cores >= 2 and num_planes >= 2:
        # Multi-TC (v7x): aim for >=2 grid steps per TensorCore so each core's
        # software pipeline still overlaps DMA with compute.  Single-TC chips
        # (v5e/v6e) run the grid as a serial loop, so never force a split there.
        target_steps = min(num_planes, 2 * num_cores)
        p = min(p, -(-num_planes // target_steps))
    return int(p)


def image_gradient(img):
    """img: (N, 1, H, W) -> (x_grad, y_grad), each (N, 1, H, W), same dtype as img."""
    N, C, H, W = img.shape
    assert C == 1, "module's conv weights are (1,1,3,3): input must have 1 channel"
    NP = N * C
    planes = img.reshape(NP, H, W)      # no dtype upcast, no padding in wrapper

    # f32 compute keeps parity with the PyTorch float conv.  (For bf16 inputs on
    # v6e/v7x the scratch could stay bf16 to halve its footprint.)
    compute_dtype = jnp.float32

    cap, cores = _tpu_caps()
    # Leave headroom under physical VMEM for compiler-internal scratch and the
    # double-buffered IO blocks: ~48 MiB on v7x (64 MiB VMEM), ~96 MiB on v5e/v6e.
    vmem_limit = max(32 * 1024 * 1024, min(cap - 16 * 1024 * 1024, (cap * 3) // 4))
    budget = (vmem_limit * 3) // 4

    lane_aligned = (W % 128 == 0)
    Wp = W if lane_aligned else W + 2   # scratch lane width (no round-up cost when W<127)

    in_itemsize = jnp.dtype(img.dtype).itemsize
    comp_itemsize = jnp.dtype(compute_dtype).itemsize
    P = _planes_per_step(NP, H, W, Wp, in_itemsize, comp_itemsize, budget, cores)
    grid = (pl.cdiv(NP, P),)

    cost = pl.CostEstimate(
        flops=14 * NP * H * W,
        transcendentals=0,
        bytes_accessed=3 * NP * H * W * in_itemsize,   # 1 read + 2 writes
    )

    gx, gy = pl.pallas_call(
        _grad_kernel,
        out_shape=(
            jax.ShapeDtypeStruct((NP, H, W), img.dtype),
            jax.ShapeDtypeStruct((NP, H, W), img.dtype),
        ),
        grid_spec=pltpu.PrefetchScalarGridSpec(
            num_scalar_prefetch=0,
            grid=grid,
            in_specs=[pl.BlockSpec((P, H, W), lambda i: (i, 0, 0))],
            out_specs=[
                pl.BlockSpec((P, H, W), lambda i: (i, 0, 0)),
                pl.BlockSpec((P, H, W), lambda i: (i, 0, 0)),
            ],
            scratch_shapes=[pltpu.VMEM((P, H + 2, Wp), compute_dtype)],
        ),
        compiler_params=pltpu.CompilerParams(
            dimension_semantics=("parallel",),
            vmem_limit_bytes=int(vmem_limit),
        ),
        cost_estimate=cost,
    )(planes)

    return gx.reshape(N, C, H, W), gy.reshape(N, C, H, W)


def _reference(img):
    """Pure-JAX reference (lax.conv) for a sanity check."""
    wx = jnp.asarray(KERNEL_X).reshape(1, 1, 3, 3)
    wy = jnp.asarray(KERNEL_Y).reshape(1, 1, 3, 3)
    dn = jax.lax.conv_dimension_numbers(img.shape, wx.shape, ("NCHW", "OIHW", "NCHW"))
    gx = jax.lax.conv_general_dilated(img, wx, (1, 1), ((1, 1), (1, 1)),
                                      dimension_numbers=dn)
    gy = jax.lax.conv_general_dilated(img, wy, (1, 1), ((1, 1), (1, 1)),
                                      dimension_numbers=dn)
    return gx, gy


if __name__ == "__main__":
    key = jax.random.PRNGKey(0)
    img = jax.random.normal(key, (2, 1, 16, 16), dtype=jnp.float32)

    gx, gy = image_gradient(img)
    jax.block_until_ready((gx, gy))

    rgx, rgy = _reference(img)
    np.testing.assert_allclose(np.asarray(gx), np.asarray(rgx), atol=1e-5, rtol=1e-5)
    np.testing.assert_allclose(np.asarray(gy), np.asarray(rgy), atol=1e-5, rtol=1e-5)

    print("KERNEL_OK")
</pallas_src>

<mosaic_0001>
module attributes {stable_mosaic.version = 11 : i64} {
  func.func @_grad_kernel(%arg0: i32, %arg1: memref<1x16x16xf32, #tpu.memory_space<vmem>>, %arg2: memref<1x16x16xf32, #tpu.memory_space<vmem>>, %arg3: memref<1x16x16xf32, #tpu.memory_space<vmem>>, %arg4: memref<1x18x18xf32, #tpu.memory_space<vmem>>) attributes {dimension_semantics = [#tpu.dimension_semantics<parallel>], iteration_bounds = array<i64: 2>, scalar_prefetch = 0 : i64, scratch_operands = 1 : i64, tpu.core_type = #tpu.core_type<tc>, window_params = [{transform_indices = @transform_0, window_bounds = array<i64: 1, 16, 16>}, {transform_indices = @transform_1, window_bounds = array<i64: 1, 16, 16>}, {transform_indices = @transform_2, window_bounds = array<i64: 1, 16, 16>}]} {
    %c0 = arith.constant 0 : index
    %c0_0 = arith.constant 0 : index
    %c0_1 = arith.constant 0 : index
    %0 = vector.load %arg1[%c0, %c0_0, %c0_1] : memref<1x16x16xf32, #tpu.memory_space<vmem>>, vector<1x16x16xf32>
    %cst = arith.constant 0.000000e+00 : f32
    %1 = vector.broadcast %cst : f32 to vector<1x1x18xf32>
    %c0_2 = arith.constant 0 : index
    %c0_3 = arith.constant 0 : index
    %c0_4 = arith.constant 0 : index
    %2 = vector.load %arg4[%c0_2, %c0_3, %c0_4] : memref<1x18x18xf32, #tpu.memory_space<vmem>>, vector<1x1x18xf32>
    tpu.vector_store %arg4[%c0_2, %c0_3, %c0_4], %1 {strides = array<i32>} : memref<1x18x18xf32, #tpu.memory_space<vmem>>, vector<1x1x18xf32>,
    %cst_5 = arith.constant 0.000000e+00 : f32
    %3 = vector.broadcast %cst_5 : f32 to vector<1x1x18xf32>
    %c0_6 = arith.constant 0 : index
    %c17 = arith.constant 17 : index
    %c0_7 = arith.constant 0 : index
    %4 = vector.load %arg4[%c0_6, %c17, %c0_7] : memref<1x18x18xf32, #tpu.memory_space<vmem>>, vector<1x1x18xf32>
    tpu.vector_store %arg4[%c0_6, %c17, %c0_7], %3 {strides = array<i32>} : memref<1x18x18xf32, #tpu.memory_space<vmem>>, vector<1x1x18xf32>,
    %cst_8 = arith.constant 0.000000e+00 : f32
    %5 = vector.broadcast %cst_8 : f32 to vector<1x16x1xf32>
    %c0_9 = arith.constant 0 : index
    %c1 = arith.constant 1 : index
    %c0_10 = arith.constant 0 : index
    %6 = vector.load %arg4[%c0_9, %c1, %c0_10] : memref<1x18x18xf32, #tpu.memory_space<vmem>>, vector<1x16x1xf32>
    tpu.vector_store %arg4[%c0_9, %c1, %c0_10], %5 {strides = array<i32>} : memref<1x18x18xf32, #tpu.memory_space<vmem>>, vector<1x16x1xf32>,
    %cst_11 = arith.constant 0.000000e+00 : f32
    %7 = vector.broadcast %cst_11 : f32 to vector<1x16x1xf32>
    %c0_12 = arith.constant 0 : index
    %c1_13 = arith.constant 1 : index
    %c17_14 = arith.constant 17 : index
    %8 = vector.load %arg4[%c0_12, %c1_13, %c17_14] : memref<1x18x18xf32, #tpu.memory_space<vmem>>, vector<1x16x1xf32>
    tpu.vector_store %arg4[%c0_12, %c1_13, %c17_14], %7 {strides = array<i32>} : memref<1x18x18xf32, #tpu.memory_space<vmem>>, vector<1x16x1xf32>,
    %c0_15 = arith.constant 0 : index
    %c1_16 = arith.constant 1 : index
    %c1_17 = arith.constant 1 : index
    %9 = vector.load %arg4[%c0_15, %c1_16, %c1_17] : memref<1x18x18xf32, #tpu.memory_space<vmem>>, vector<1x16x16xf32>
    tpu.vector_store %arg4[%c0_15, %c1_16, %c1_17], %0 {strides = array<i32>} : memref<1x18x18xf32, #tpu.memory_space<vmem>>, vector<1x16x16xf32>,
    %c0_18 = arith.constant 0 : index
    %c0_19 = arith.constant 0 : index
    %c0_20 = arith.constant 0 : index
    %10 = vector.load %arg4[%c0_18, %c0_19, %c0_20] : memref<1x18x18xf32, #tpu.memory_space<vmem>>, vector<1x16x18xf32>
    %c0_21 = arith.constant 0 : index
    %c1_22 = arith.constant 1 : index
    %c0_23 = arith.constant 0 : index
    %11 = vector.load %arg4[%c0_21, %c1_22, %c0_23] : memref<1x18x18xf32, #tpu.memory_space<vmem>>, vector<1x16x18xf32>
    %c0_24 = arith.constant 0 : index
    %c2 = arith.constant 2 : index
    %c0_25 = arith.constant 0 : index
    %12 = vector.load %arg4[%c0_24, %c2, %c0_25] : memref<1x18x18xf32, #tpu.memory_space<vmem>>, vector<1x16x18xf32>
    %cst_26 = arith.constant 2.000000e+00 : f32
    %13 = vector.broadcast %cst_26 : f32 to vector<1x16x18xf32>
    %14 = arith.mulf %13, %11 : vector<1x16x18xf32>
    %15 = arith.addf %10, %14 : vector<1x16x18xf32>
    %16 = arith.addf %15, %12 : vector<1x16x18xf32>
    %17 = arith.addf %16, %12 : vector<1x16x18xf32>
    %18 = arith.subf %10, %12 : vector<1x16x18xf32>
    %19 = vector.extract_strided_slice %16 {offsets = [0, 0, 0], sizes = [1, 16, 16], strides = [1, 1, 1]} : vector<1x16x18xf32> to vector<1x16x16xf32>
    %20 = vector.extract_strided_slice %17 {offsets = [0, 0, 2], sizes = [1, 16, 16], strides = [1, 1, 1]} : vector<1x16x18xf32> to vector<1x16x16xf32>
    %21 = arith.subf %19, %20 : vector<1x16x16xf32>
    %22 = vector.extract_strided_slice %18 {offsets = [0, 0, 0], sizes = [1, 16, 16], strides = [1, 1, 1]} : vector<1x16x18xf32> to vector<1x16x16xf32>
    %23 = vector.extract_strided_slice %18 {offsets = [0, 0, 1], sizes = [1, 16, 16], strides = [1, 1, 1]} : vector<1x16x18xf32> to vector<1x16x16xf32>
    %cst_27 = arith.constant 2.000000e+00 : f32
    %24 = vector.broadcast %cst_27 : f32 to vector<1x16x16xf32>
    %25 = arith.mulf %24, %23 : vector<1x16x16xf32>
    %26 = arith.addf %22, %25 : vector<1x16x16xf32>
    %27 = vector.extract_strided_slice %18 {offsets = [0, 0, 2], sizes = [1, 16, 16], strides = [1, 1, 1]} : vector<1x16x18xf32> to vector<1x16x16xf32>
    %28 = arith.addf %26, %27 : vector<1x16x16xf32>
    %c0_28 = arith.constant 0 : index
    %c0_29 = arith.constant 0 : index
    %c0_30 = arith.constant 0 : index
    %29 = vector.load %arg2[%c0_28, %c0_29, %c0_30] : memref<1x16x16xf32, #tpu.memory_space<vmem>>, vector<1x16x16xf32>
    tpu.vector_store %arg2[%c0_28, %c0_29, %c0_30], %21 {strides = array<i32>} : memref<1x16x16xf32, #tpu.memory_space<vmem>>, vector<1x16x16xf32>,
    %c0_31 = arith.constant 0 : index
    %c0_32 = arith.constant 0 : index
    %c0_33 = arith.constant 0 : index
    %30 = vector.load %arg3[%c0_31, %c0_32, %c0_33] : memref<1x16x16xf32, #tpu.memory_space<vmem>>, vector<1x16x16xf32>
    tpu.vector_store %arg3[%c0_31, %c0_32, %c0_33], %28 {strides = array<i32>} : memref<1x16x16xf32, #tpu.memory_space<vmem>>, vector<1x16x16xf32>,
    return
  }
  func.func @transform_0(%arg0: i32) -> (i32, i32, i32) {
    %c0_i32 = arith.constant 0 : i32
    %c0_i32_0 = arith.constant 0 : i32
    %c0_i32_1 = arith.constant 0 : i32
    return %arg0, %c0_i32, %c0_i32_0 : i32, i32, i32
  }
  func.func @transform_1(%arg0: i32) -> (i32, i32, i32) {
    %c0_i32 = arith.constant 0 : i32
    %c0_i32_0 = arith.constant 0 : i32
    %c0_i32_1 = arith.constant 0 : i32
    return %arg0, %c0_i32, %c0_i32_0 : i32, i32, i32
  }
  func.func @transform_2(%arg0: i32) -> (i32, i32, i32) {
    %c0_i32 = arith.constant 0 : i32
    %c0_i32_0 = arith.constant 0 : i32
    %c0_i32_1 = arith.constant 0 : i32
    return %arg0, %c0_i32, %c0_i32_0 : i32, i32, i32
  }
}

</mosaic_0001>

<bundles_post_ra>
// kernel: tpu_custom_call.1
= control target key start
LH: loop header
LB: loop body
LE: loop exit
PB: predicated region body
PF: predicated region fallthrough
CT: control target
= control target key end

     0   :  { %8 = vsyncpa [#allocation4], 0  ;;  %s841_s0 = inlined_call_operand.hbm [shape: f32[2,16,16], index: 0, kind: input, shape index: {}]   ;;  %s842_s1 = inlined_call_operand.hbm [shape: f32[2,16,16], index: 1, kind: output, shape index: {0}]   ;;  %s843_s2 = inlined_call_operand.hbm [shape: f32[2,16,16], index: 2, kind: output, shape index: {1}]  }
   0x1   :  { %10 = vsyncpa [#allocation4 + $0x1], 0 }
   0x2   :  { %11 = vsyncpa [#allocation5], 0 }
   0x3   :  { %13 = vsyncpa [#allocation5 + $0x1], 0 }
   0x4   :  { %14 = vsyncpa [#allocation8], 0 }
   0x5   :  { %16 = vsyncpa [#allocation8 + $0x1], 0  ;;  %s624_s9 = smov 0   ;;  %s626_s10 = smov 0  }
   0x6   :  { %s628_s11 = smov 0   ;;  %s630_s12 = smov 0  }
   0x7 LB: > { %s645_s13 = sadd.s32 4294967295, %s596_s12   ;;  %s388_s14 = sadd.s32 4294967294, %s596_s12   ;;  %s596_s12 = sphi %s630_s12, %s856_s12   ;;  %s592_s11 = sphi %s628_s11, %s855_s11   ;;  %s588_s10 = sphi %s626_s10, %s854_s10   ;;  %s584_s9 = sphi %s624_s9, %s853_s9  }
   0x8   : > { %s649_s15 = sadd.s32 1, %s596_s12   ;;  %s29_s16 = sadd.s32 1, %s592_s11 }
   0x9   : > { %s26_s17 = ssub.s32 %s596_s12, %s649_s15  ;;  %p36_p0 = scmp.ne.s32.totalorder %s592_s11, %s588_s10 }
   0xa   : > { %p27_p1 = scmp.eq.s32.totalorder %s26_s17, 0  ;;  %p37_p2 = scmp.eq.s32.totalorder %s596_s12, 0 }
   0xb   : > { %p42_p3 = scmp.ne.s32.totalorder %s588_s10, %s584_s9  ;;  %p43_p4 = scmp.eq.s32.totalorder %s645_s13, 0 }
   0xc   : > { %s661_s18 = scalar_select %p27_p1, %s592_s11, %s29_s16  }
   0xd   : > { %p663_p5 = por %p37_p2, %p36_p0  ;;  %p667_p6 = por %p43_p4, %p42_p3 }
   0xe   : > { %p66_p7 = scmp.eq.s32.totalorder %s645_s13, 1  ;;  %p72_p8 = scmp.eq.s32.totalorder %s388_s14, 1 }
   0xf   : > { %p426_p10 = scmp.lt.s32.totalorder %s596_s12, 2  ;;  %s118_s23 = sand.u32 1, %s592_s11  }
  0x10   : > { %p674_p11 = por %p66_p7, %p36_p0  ;;  %p678_p12 = por %p72_p8, %p42_p3 }
  0x11   : > { %s406_s24 = sshll.u32 %s596_s12, 8  ;;  %s391_s25 = sshll.u32 %s118_s23, 4 }
  0x12   : > { %s847_s21 = scalar_select %p674_p11, 1, 0 }
  0x13   : > { %s848_s22 = scalar_select %p678_p12, 1, 0 }
  0x14   : > { %s687_s28 = scalar_lea.hbm %s841_s0, %s406_s24  ;;  %s122_s29 = scalar_lea.vmem [#allocation3], %s391_s25 }
  0x15   : > { %s129_s30 = sshll.u32 %s122_s29, 4  ;;  %p691_p13 = pnand %p426_p10, %p663_p5  ;;  %s695_s30 = int_to_ptr.vmem [resolvable:$true] %s129_s30 }
  0x16   : > { %s697_s4 = scalar_lea.sflag [#allocation4], %s118_s23  ;;  %s468_s5 = scalar_lea.hbm %s687_s28, 256 }
  0x17   : > { %p469_p0 = scmp.ne.s32.totalorder %s687_s28, %s468_s5  ;;  %p470_p1 = pneg %p691_p13 }
  0x18   : > { %s473_s8 = scalar_lea.hbm %s841_s0, 512  ;;  %p474_p4 = scmp.lt.u32.totalorder %s687_s28, %s841_s0 }
  0x19   : > { %p471_p2 = pnand %p470_p1, %p469_p0  ;;  %p475_p5 = scmp.lt.u32.totalorder %s473_s8, %s468_s5 }
  0x1a   : > { %p477_p8 = scmp.lt.u32.totalorder %s468_s5, %s687_s28 }
  0x1b   : > { %p472_p3 = pneg %p471_p2  ;;  %p476_p7 = por %p475_p5, %p474_p4 }
  0x1d   : > { %p478_p10 = por %p477_p8, %p476_p7 }
  0x1f   : > { %p479_p9 = pnand %p478_p10, %p472_p3 }
  0x21   : > { %482 = shalt.err (!%p479_p9)
}
  0x22   : > { %s483_s17 = scalar_lea.vmem %s695_s30, 256  ;;  %s598_s19 = smov [#allocation3]  }
  0x23   : > { %p484_p0 = scmp.ne.s32.totalorder %s695_s30, %s483_s17  ;;  %s488_s23 = sshll.u32 %s598_s19, 4  ;;  %s489_s23 = int_to_ptr.vmem [resolvable:$false] %s488_s23 }
  0x24   : > { %s490_s24 = scalar_lea.vmem %s489_s23, 512  ;;  %p491_p11 = scmp.lt.s32.totalorder %s695_s30, %s489_s23 }
  0x25   : > { %p486_p2 = pnand %p484_p0, %p470_p1  ;;  %p492_p4 = scmp.lt.s32.totalorder %s490_s24, %s483_s17 }
  0x27   : > { %p487_p12 = pneg %p486_p2  ;;  %p493_p5 = por %p492_p4, %p491_p11 }
  0x29   : > { %p494_p7 = pnand %p493_p5, %p487_p12 }
  0x2b   : > { %497 = shalt.err (!%p494_p7)
}
  0x2c   : > { %s599_s25 = smov 128   ;;  %s600_s26 = smov 8  }
  0x2d   : > { %418 = dma.hbm_to_vmem [thread:$0]  (!%p691_p13), %s687_s28, 256, %s695_s30, %s697_s4, %s599_s25, %s599_s25, %s600_s26  }
  0x2e   : > { %p394_p9 = scmp.ge.s32.totalorder %s596_s12, 1  ;;  %p137_p1 = scmp.lt.s32.totalorder %s596_s12, 3 }
  0x30   : > { %p138_p3 = pnand %p394_p9, %p137_p1 }
  0x31   : > { %s728_s27 = sand.u32 (!%p138_p3), 1, %s588_s10  }
  0x32   : > { %141 = sbr.rel (%p138_p3) target bundleno = 355 (0x163), region = 24  ;;  %s731_s29 = sshll.u32 (!%p138_p3), %s728_s27, 4 }
  0x33   : > { %s144_s5 = scalar_lea.sflag (!%p138_p3), [#allocation4], %s728_s27  ;;  %s147_s6 = scalar_lea.vmem (!%p138_p3), [#allocation3], %s731_s29 }
  0x39   : > { %571 = dma.done.wait (%p667_p6), %s144_s5, 256  }
  0x3a   : > { %573 = vsyncadd (%p667_p6), %s144_s5, 4294967040  ;;  %vm175_vm0 = vcmask 139264   ;;  %vm178_vm1 = vcmask 7168   ;;  %vm181_vm2 = vcmask 146568   ;;  %v601_v0 = vmov 0.0   ;;  %v173_v1 = vld [vmem:[%s147_s6] sm:$0xff] }
  0x3b   : > { %176 = vst.msk [vmem:[#allocation2] sm:$0x1] %vm175_vm0, %v601_v0  ;;  %177 = vst.msk [vmem:[#allocation2 + $0x11] sm:$0x1] %vm175_vm0, %v601_v0  ;;  %s602_s28 = smov 1   ;;  %v174_v2 = vld [vmem:[%s147_s6 + $0x8] sm:$0xff] }
  0x3c   : > { %179 = vst.msk [vmem:[#allocation2 + $0x1] sm:$0xff] %vm178_vm1, %v601_v0  ;;  %180 = vst.msk [vmem:[#allocation2 + $0x9] sm:$0xff] %vm178_vm1, %v601_v0  ;;  %186 = vrot.lane.b32.xlu0 %v173_v1, %s602_s28  ;;  %vm192_vm3 = vcmask 138248   ;;  %s603_s20 = smov 127   ;;  %s604_s30 = smov 126   ;;  %vm243_vm4 = vcmask 130048  }
  0x3d   : > { %182 = vst.msk [vmem:[#allocation2 + $0x1] sm:$0xff] %vm181_vm2, %v601_v0  ;;  %183 = vst.msk [vmem:[#allocation2 + $0x9] sm:$0xff] %vm181_vm2, %v601_v0  ;;  %s165_s3 = scalar_lea.vmem [#allocation6], %s731_s29  ;;  %s407_s7 = sshll.u32 %s645_s13, 8 }
  0x3e   : > { %s267_s4 = sshll.u32 %s165_s3, 4  ;;  %s745_s8 = scalar_lea.vmem [#allocation7], %s731_s29  ;;  %s742_s4 = int_to_ptr.vmem [resolvable:$true] %s267_s4 }
  0x3f   : > { %s283_s14 = sshll.u32 %s745_s8, 4  ;;  %s755_s19 = scalar_lea.hbm %s842_s1, %s407_s7  ;;  %s757_s14 = int_to_ptr.vmem [resolvable:$true] %s283_s14 }
  0x40   : > { %188 = vrot.lane.b32.xlu0 %v174_v2, %s602_s28  ;;  %s249_s23 = scalar_lea.sflag [#allocation5], %s728_s27  ;;  %s498_s24 = scalar_lea.vmem %s742_s4, 256 }
  0x41   : > { %p499_p6 = scmp.ne.s32.totalorder %s742_s4, %s498_s24  ;;  %p850_p11 = scmp.ne.s32.totalorder %s847_s21, 0 }
  0x42   : > { %s605_s25 = smov [#allocation6]  }
  0x43   : > { %p500_p12 = pnand %p499_p6, %p850_p11  ;;  %s502_s26 = sshll.u32 %s605_s25, 4  ;;  %s503_s26 = int_to_ptr.vmem [resolvable:$false] %s502_s26 }
  0x44   : > { %s504_s29 = scalar_lea.vmem %s503_s26, 512  ;;  %p505_p8 = scmp.lt.s32.totalorder %s742_s4, %s503_s26 }
  0x45   : > { %p501_p13 = pneg %p500_p12  ;;  %p506_p10 = scmp.lt.s32.totalorder %s504_s29, %s498_s24 }
  0x47   : > { %p507_p0 = por %p506_p10, %p505_p8 }
  0x49   : > { %p508_p2 = pnand %p507_p0, %p501_p13 }
  0xae   : > { %v187_v3 = vpop.permute.xlu0 %186 }
  0xaf   : > { %193 = vst.msk [vmem:[#allocation2 + $0x1] sm:$0xff] %vm192_vm3, %v187_v3 }
  0xb2   : > { %v189_v4 = vpop.permute.xlu0 %188 }
  0xb3   : > { %194 = vst.msk [vmem:[#allocation2 + $0x9] sm:$0xff] %vm192_vm3, %v189_v4 }
  0xb6   : > { %v197_v5 = vld [vmem:[#allocation2 + $0x1] sm:$0xff] }
  0xb7   : > { %v201_v6 = vmul.f32 2.0, %v197_v5  ;;  %v195_v7 = vld [vmem:[#allocation2] sm:$0xff] }
  0xb9   : > { %v203_v8 = vadd.f32 %v201_v6, %v195_v7 }
  0xba   : > { %v199_v9 = vld [vmem:[#allocation2 + $0x2] sm:$0xff]  ;;  %v200_v11 = vld [vmem:[#allocation2 + $0xa] sm:$0xff] }
  0xbb   : > { %v196_v10 = vld [vmem:[#allocation2 + $0x8] sm:$0xff]  ;;  %v209_v12 = vsub.f32 %v195_v7, %v199_v9  ;;  %v205_v13 = vadd.f32 %v203_v8, %v199_v9 }
  0xbc   : > { %v198_v14 = vld [vmem:[#allocation2 + $0x9] sm:$0xff]  ;;  %v210_v18 = vsub.f32 %v196_v10, %v200_v11 }
  0xbd   : > { %v202_v15 = vmul.f32 2.0, %v198_v14  ;;  %v221_v16 = vmul.f32 2.0, %v209_v12  ;;  %v207_v17 = vadd.f32 %v205_v13, %v199_v9 }
  0xbe   : > { %v222_v20 = vmul.f32 2.0, %v210_v18 }
  0xbf   : > { %v204_v19 = vadd.f32 %v202_v15, %v196_v10  ;;  %225 = vrot.lane.b32.xlu1 %v221_v16, %s603_s20  ;;  %213 = vrot.lane.b32.xlu0 %v207_v17, %s604_s30 }
  0xc1   : > { %v206_v21 = vadd.f32 %v204_v19, %v200_v11 }
  0xc3   : > { %235 = vrot.lane.b32.xlu0 %v209_v12, %s604_s30  ;;  %227 = vrot.lane.b32.xlu1 %v222_v20, %s603_s20  ;;  %v208_v22 = vadd.f32 %v206_v21, %v200_v11 }
  0xc7   : > { %215 = vrot.lane.b32.xlu1 %v208_v22, %s604_s30 }
  0xcb   : > { %237 = vrot.lane.b32.xlu1 %v210_v18, %s604_s30 }
 0x131   : > { %v226_v23 = vpop.permute.xlu1 %225  ;;  %v214_v24 = vpop.permute.xlu0 %213 }
 0x132   : > { %v219_v25 = vsub.f32 %v205_v13, %v214_v24  ;;  %v231_v26 = vadd.f32 %v226_v23, %v209_v12 }
 0x134   : > { %244 = vst.msk [vmem:[%s165_s3] sm:$0xff] %vm243_vm4, %v219_v25 }
 0x135   : > { %v236_v27 = vpop.permute.xlu0 %235  ;;  %v228_v28 = vpop.permute.xlu1 %227 }
 0x136   : > { %v241_v29 = vadd.f32 %v236_v27, %v231_v26  ;;  %v232_v32 = vadd.f32 %v228_v28, %v210_v18 }
 0x138   : > { %246 = vst.msk [vmem:[%s745_s8] sm:$0xff] %vm243_vm4, %v241_v29 }
 0x139   : > { %v216_v30 = vpop.permute.xlu1 %215 }
 0x13a   : > { %v220_v31 = vsub.f32 %v206_v21, %v216_v30 }
 0x13c   : > { %245 = vst.msk [vmem:[%s165_s3 + $0x8] sm:$0xff] %vm243_vm4, %v220_v31 }
 0x13d   : > { %v238_v33 = vpop.permute.xlu1 %237 }
 0x13e   : > { %511 = shalt.err (!%p508_p2)
}
 0x13f   : > { %s512_s5 = scalar_lea.hbm %s755_s19, 256  ;;  %s516_s20 = scalar_lea.hbm %s842_s1, 512 }
 0x140   : > { %p513_p4 = scmp.ne.s32.totalorder %s755_s19, %s512_s5  ;;  %p517_p9 = scmp.lt.u32.totalorder %s755_s19, %s842_s1 }
 0x141   : > { %p518_p1 = scmp.lt.u32.totalorder %s516_s20, %s512_s5  ;;  %p520_p6 = scmp.lt.u32.totalorder %s512_s5, %s755_s19 }
 0x142   : > { %p514_p5 = pnand %p513_p4, %p850_p11 }
 0x143   : > { %p519_p3 = por %p518_p1, %p517_p9 }
 0x144   : > { %p515_p7 = pneg %p514_p5 }
 0x145   : > { %p521_p12 = por %p520_p6, %p519_p3 }
 0x147   : > { %p522_p13 = pnand %p521_p12, %p515_p7 }
 0x149   : > { %525 = shalt.err (!%p522_p13)
}
 0x14a   : > { %s606_s16 = smov 128   ;;  %s607_s17 = smov 8   ;;  %v242_v34 = vadd.f32 %v238_v33, %v232_v32 }
 0x14b   : > { %411 = dma.vmem_to_hbm [thread:$0]  (%p850_p11), %s742_s4, 256, %s755_s19, %s249_s23, %s606_s16, %s606_s16, %s607_s17  }
 0x14c   : > { %s792_s26 = scalar_lea.hbm %s843_s2, %s407_s7  ;;  %247 = vst.msk [vmem:[%s745_s8 + $0x8] sm:$0xff] %vm243_vm4, %v242_v34  ;;  %s254_s29 = scalar_lea.sflag [#allocation8], %s728_s27 }
 0x14d   : > { %s526_s5 = scalar_lea.vmem %s757_s14, 256  ;;  %s608_s6 = smov [#allocation7]  }
 0x14e   : > { %p527_p8 = scmp.ne.s32.totalorder %s757_s14, %s526_s5  ;;  %s530_s28 = sshll.u32 %s608_s6, 4  ;;  %s531_s28 = int_to_ptr.vmem [resolvable:$false] %s530_s28 }
 0x14f   : > { %s532_s20 = scalar_lea.vmem %s531_s28, 512  ;;  %p533_p2 = scmp.lt.s32.totalorder %s757_s14, %s531_s28 }
 0x150   : > { %p528_p10 = pnand %p527_p8, %p850_p11  ;;  %p534_p4 = scmp.lt.s32.totalorder %s532_s20, %s526_s5 }
 0x152   : > { %p529_p0 = pneg %p528_p10  ;;  %p535_p5 = por %p534_p4, %p533_p2 }
 0x154   : > { %p536_p7 = pnand %p535_p5, %p529_p0 }
 0x156   : > { %539 = shalt.err (!%p536_p7)
}
 0x157   : > { %s540_s13 = scalar_lea.hbm %s792_s26, 256  ;;  %s544_s8 = scalar_lea.hbm %s843_s2, 512 }
 0x158   : > { %p541_p9 = scmp.ne.s32.totalorder %s792_s26, %s540_s13  ;;  %p545_p6 = scmp.lt.u32.totalorder %s792_s26, %s843_s2 }
 0x159   : > { %p546_p12 = scmp.lt.u32.totalorder %s544_s8, %s540_s13  ;;  %p548_p8 = scmp.lt.u32.totalorder %s540_s13, %s792_s26 }
 0x15a   : > { %p542_p1 = pnand %p541_p9, %p850_p11 }
 0x15b   : > { %p547_p13 = por %p546_p12, %p545_p6 }
 0x15c   : > { %p543_p3 = pneg %p542_p1 }
 0x15d   : > { %p549_p10 = por %p548_p8, %p547_p13 }
 0x15f   : > { %p550_p0 = pnand %p549_p10, %p543_p3 }
 0x161   : > { %553 = shalt.err (!%p550_p0)
}
 0x162   : > { %412 = dma.vmem_to_hbm [thread:$0]  (%p850_p11), %s757_s14, 256, %s792_s26, %s254_s29, %s606_s16, %s606_s16, %s607_s17  }
 0x163 PF: > { %s298_s30 = sand.u32 1, %s584_s9   ;;  %p851_p2 = scmp.ne.s32.totalorder %s848_s22, 0 }
 0x164   : > { %p852_p4 = scmp.ge.s32.totalorder %s596_s12, 2  ;;  %s299_s3 = scalar_lea.sflag [#allocation5], %s298_s30 }
 0x166   : > { %p420_p5 = pnand %p852_p4, %p851_p2 }
 0x168   : > { %575 = dma.done.wait (!%p420_p5), %s299_s3, 256  }
 0x169   : > { %577 = vsyncadd (!%p420_p5), %s299_s3, 4294967040  ;;  %s308_s21 = scalar_lea.sflag [#allocation8], %s298_s30 }
 0x16a   : > { %579 = dma.done.wait (!%p420_p5), %s308_s21, 256  }
 0x16b   : > { %581 = vsyncadd (!%p420_p5), %s308_s21, 4294967040  ;;  %p19_p11 = scmp.ge.s32.totalorder %s649_s15, 4   ;;  %s853_s9 = smov %s588_s10 }
 0x16c   : > { %s854_s10 = smov %s592_s11  ;;  %s855_s11 = smov %s661_s18 }
 0x16d   : > { %s856_s12 = smov %s649_s15  ;;  %21 = sbr.rel (!%p19_p11) target bundleno = 7 (0x7), region = 86 }
 0x174   :  { %313 = vsyncpa [#allocation4], 1 }
 0x175   :  { %315 = vsyncpa [#allocation4 + $0x1], 1 }
 0x176   :  { %316 = vsyncpa [#allocation5], 1 }
 0x177   :  { %318 = vsyncpa [#allocation5 + $0x1], 1 }
 0x178   :  { %319 = vsyncpa [#allocation8], 1 }
 0x179   :  { %321 = vsyncpa [#allocation8 + $0x1], 1 }

</bundles_post_ra>
